<compile_context>
chip_gen: v5e
topology: v5e:2x2
jax: 0.10.0
libtpu: 0.0.40
codegen_flags: <defaults>
</compile_context>

<pallas_src>
import jax
import jax.numpy as jnp
from jax import lax
from jax.experimental import pallas as pl
from jax.experimental.pallas import tpu as pltpu


# --------------------------------------------------------------------------------------
# Weight preprocessing (tiny, plain JAX): per-kh "band" matrices.
#   B[kh, w_in*Ci + ci, w_out*Co + co] = w_hwio[kh, w_in - w_out + 1, ci, co]
#   (zero when the kw index falls outside [0,3)), i.e. the kw shift, the channel
#   contraction and the width zero-padding are folded into one matmul operand.
# --------------------------------------------------------------------------------------
def _make_band_matrices(w_hwio, W):
    KH, KW, Ci, Co = w_hwio.shape
    pad = (KW - 1) // 2
    kw = jnp.arange(KW)[:, None, None]          # (KW,1,1)
    w_in = jnp.arange(W)[None, :, None]         # (1,W,1)
    w_out = jnp.arange(W)[None, None, :]        # (1,1,W)
    sel = (w_in == w_out + kw - pad).astype(w_hwio.dtype)      # (KW, W, W)
    b = jnp.einsum("kio,hkcd->hicod", sel, w_hwio)             # (KH, W, Ci, W, Co)
    return b.reshape(KH, W * Ci, W * Co)


def _make_blockdiag(ws, W):
    # 1x1 shortcut conv as a block-diagonal (W*Cin, W*Cout) matrix.
    Ci, Co = ws.shape
    b = jnp.einsum("io,cd->icod", jnp.eye(W, dtype=ws.dtype), ws)
    return b.reshape(W * Ci, W * Co)


# --------------------------------------------------------------------------------------
# In-kernel conv helper: 3x3 conv (pad=1) on a stack of image rows.
# --------------------------------------------------------------------------------------
def _conv3x3_rows(x2, b_ref, rmod, H):
    """x2   : (M, W*Ci) f32 rows, M = B_tile*H (images stacked along rows)
       b_ref: (3, W*Ci, W*Co) bf16 per-kh band matrices (kw shift + channel mix + W pad)
       rmod : (M, 1) int32 = row index within its own image (m % H)
       returns (M, W*Co) f32 (f32 accumulation, single-pass bf16 MXU matmuls)."""
    M = x2.shape[0]
    xb = x2.astype(jnp.bfloat16)
    f32 = jnp.float32
    y0 = jnp.dot(xb, b_ref[0], preferred_element_type=f32)   # tap needs input row h-1
    y1 = jnp.dot(xb, b_ref[1], preferred_element_type=f32)   # tap uses input row h
    y2 = jnp.dot(xb, b_ref[2], preferred_element_type=f32)   # tap needs input row h+1
    # kh=0: output row m takes y0 from row m-1; zero at each image's first row (pad).
    y0s = jnp.where(rmod == 0, 0.0, pltpu.roll(y0, 1, axis=0))
    # kh=2: output row m takes y2 from row m+1; zero at each image's last row (pad).
    y2s = jnp.where(rmod == H - 1, 0.0, pltpu.roll(y2, M - 1, axis=0))
    return y1 + y0s + y2s


# --------------------------------------------------------------------------------------
# Kernels (one batch tile per grid step; block shape (B_tile, H, W*C))
# --------------------------------------------------------------------------------------
def _residual_block_kernel_proj(x_ref, b1_ref, b2_ref, bs_ref, o_ref):
    """Projection (1x1 conv) shortcut variant."""
    B, H, WCin = x_ref.shape
    WCout = o_ref.shape[2]
    M = B * H
    x2 = x_ref[...].reshape(M, WCin)                                   # f32 rows
    rmod = lax.broadcasted_iota(jnp.int32, (M, 1), 0) % H              # row-in-image

    h1 = jnp.maximum(_conv3x3_rows(x2, b1_ref, rmod, H), 0.0)          # relu(conv1)
    out = _conv3x3_rows(h1, b2_ref, rmod, H)                           # conv2
    sc = jnp.dot(x2.astype(jnp.bfloat16), bs_ref[...],
                 preferred_element_type=jnp.float32)                   # 1x1 shortcut
    o_ref[...] = jnp.maximum(out + sc, 0.0).reshape(B, H, WCout).astype(o_ref.dtype)


def _residual_block_kernel_id(x_ref, b1_ref, b2_ref, o_ref):
    """Identity shortcut variant (in_channels == out_channels, stride == 1)."""
    B, H, WC = x_ref.shape
    M = B * H
    x2 = x_ref[...].reshape(M, WC)
    rmod = lax.broadcasted_iota(jnp.int32, (M, 1), 0) % H

    h1 = jnp.maximum(_conv3x3_rows(x2, b1_ref, rmod, H), 0.0)
    out = _conv3x3_rows(h1, b2_ref, rmod, H)
    o_ref[...] = jnp.maximum(out + x2, 0.0).reshape(B, H, WC).astype(o_ref.dtype)


# --------------------------------------------------------------------------------------
# Batch-tile choice: biggest divisor of N that keeps B_tile*H rows within budget; keep
# >= 2 grid steps when there is plenty of work so v7x megacore can use both TensorCores
# (on v5e/v6e the grid is a serial loop -> otherwise prefer one big step).
# --------------------------------------------------------------------------------------
def _pick_batch_tile(N, H, target_rows=256, max_rows=1024):
    divisors = [d for d in range(1, N + 1) if N % d == 0]
    fits = [d for d in divisors if d * H <= max_rows] or [1]
    b = max(fits)
    if b == N and N * H >= 2 * target_rows:
        smaller = [d for d in fits if d < N and d * H >= target_rows]
        if smaller:
            b = max(smaller)
    return b


# --------------------------------------------------------------------------------------
# NHWC-resident entry point (preferred: no transposes) + NCHW wrapper matching PyTorch.
# --------------------------------------------------------------------------------------
def residual_block_pallas_nhwc(x_nhwc, w1_oihw, w2_oihw, ws_oihw=None, stride=1,
                               batch_tile=None):
    if stride != 1:
        # TODO(synk): stride > 1 not implemented in this Pallas kernel.
        raise NotImplementedError("stride > 1 not implemented in this Pallas kernel")

    N, H, W, Cin = x_nhwc.shape
    Cout = int(w1_oihw.shape[0])

    # Lane-dense activation layout: (N, H, W*Cin), f32 at the boundary (matches module).
    x = x_nhwc.reshape(N, H, W * Cin).astype(jnp.float32)

    # OIHW -> HWIO -> per-kh band matrices, cast to bf16 (single-pass MXU operands).
    w1 = jnp.transpose(w1_oihw, (2, 3, 1, 0)).astype(jnp.float32)    # (3,3,Cin,Cout)
    w2 = jnp.transpose(w2_oihw, (2, 3, 1, 0)).astype(jnp.float32)    # (3,3,Cout,Cout)
    b1 = _make_band_matrices(w1, W).astype(jnp.bfloat16)             # (3, W*Cin,  W*Cout)
    b2 = _make_band_matrices(w2, W).astype(jnp.bfloat16)             # (3, W*Cout, W*Cout)

    bt = batch_tile if batch_tile is not None else _pick_batch_tile(N, H)
    assert N % bt == 0, (N, bt)
    grid = (N // bt,)

    x_spec = pl.BlockSpec((bt, H, W * Cin), lambda n: (n, 0, 0))
    o_spec = pl.BlockSpec((bt, H, W * Cout), lambda n: (n, 0, 0))
    b1_spec = pl.BlockSpec(b1.shape, lambda n: (0, 0, 0))
    b2_spec = pl.BlockSpec(b2.shape, lambda n: (0, 0, 0))

    if ws_oihw is None:
        assert Cin == Cout, "identity shortcut requires in_channels == out_channels"
        kernel = _residual_block_kernel_id
        in_specs = [x_spec, b1_spec, b2_spec]
        operands = (x, b1, b2)
    else:
        ws = jnp.transpose(ws_oihw[:, :, 0, 0], (1, 0)).astype(jnp.float32)  # (Cin, Cout)
        bs = _make_blockdiag(ws, W).astype(jnp.bfloat16)                     # (W*Cin, W*Cout)
        kernel = _residual_block_kernel_proj
        in_specs = [x_spec, b1_spec, b2_spec,
                    pl.BlockSpec(bs.shape, lambda n: (0, 0))]
        operands = (x, b1, b2, bs)

    out = pl.pallas_call(
        kernel,
        out_shape=jax.ShapeDtypeStruct((N, H, W * Cout), jnp.float32),
        grid=grid,
        in_specs=in_specs,
        out_specs=o_spec,
        compiler_params=pltpu.CompilerParams(
            dimension_semantics=("parallel",),      # batch-tile axis shards on v7x
            vmem_limit_bytes=48 * 1024 * 1024,      # above 32 MiB default scoped limit
        ),
    )(*operands)

    return out.reshape(N, H, W, Cout)


def residual_block_pallas(x_nchw, w1_oihw, w2_oihw, ws_oihw=None, stride=1,
                          batch_tile=None):
    """NCHW in / NCHW out, matching the PyTorch module (adds two layout transposes;
    prefer residual_block_pallas_nhwc in an NHWC-resident model)."""
    x_nhwc = jnp.transpose(x_nchw, (0, 2, 3, 1))
    out = residual_block_pallas_nhwc(x_nhwc, w1_oihw, w2_oihw, ws_oihw,
                                     stride=stride, batch_tile=batch_tile)
    return jnp.transpose(out, (0, 3, 1, 2))


# --------------------------------------------------------------------------------------
# Pure-JAX (XLA) f32 reference replicating the PyTorch forward exactly.
# --------------------------------------------------------------------------------------
def residual_block_ref(x, w1, w2, ws):
    dn = ("NCHW", "OIHW", "NCHW")
    hi = lax.Precision.HIGHEST
    out = jax.nn.relu(
        lax.conv_general_dilated(x, w1, (1, 1), ((1, 1), (1, 1)),
                                 dimension_numbers=dn, precision=hi))
    out = lax.conv_general_dilated(out, w2, (1, 1), ((1, 1), (1, 1)),
                                   dimension_numbers=dn, precision=hi)
    if ws is None:
        sc = x
    else:
        sc = lax.conv_general_dilated(x, ws, (1, 1), ((0, 0), (0, 0)),
                                      dimension_numbers=dn, precision=hi)
    return jax.nn.relu(out + sc)


def _check(out, ref, name):
    # Kernel uses single-pass bf16 MXU operands (f32 accumulation), so compare with a
    # bf16-appropriate tolerance (typical max-abs error ~1e-2 at these magnitudes).
    err = float(jnp.max(jnp.abs(out - ref)))
    rel = float(jnp.linalg.norm(out - ref) / (jnp.linalg.norm(ref) + 1e-12))
    assert err < 1e-1 and rel < 2e-2, (name, err, rel)


if __name__ == "__main__":
    key = jax.random.PRNGKey(0)
    kx, k1, k2, k3, k4, k5, k6, k7 = jax.random.split(key, 8)

    # Case 1: ResidualBlock(in=4, out=8, stride=1) -> projection (1x1 conv) shortcut.
    N, Cin, Cout, H, W = 2, 4, 8, 16, 16
    x = jax.random.normal(kx, (N, Cin, H, W), jnp.float32)
    w1 = jax.random.normal(k1, (Cout, Cin, 3, 3), jnp.float32) / (Cin * 9) ** 0.5
    w2 = jax.random.normal(k2, (Cout, Cout, 3, 3), jnp.float32) / (Cout * 9) ** 0.5
    ws = jax.random.normal(k3, (Cout, Cin, 1, 1), jnp.float32) / Cin ** 0.5

    out = jax.block_until_ready(residual_block_pallas(x, w1, w2, ws, stride=1))
    ref = jax.block_until_ready(residual_block_ref(x, w1, w2, ws))
    assert out.shape == (N, Cout, H, W), out.shape
    _check(out, ref, "projection")

    # Case 2: ResidualBlock(in=8, out=8, stride=1) -> identity shortcut.
    C = 8
    x2 = jax.random.normal(k4, (N, C, H, W), jnp.float32)
    w1b = jax.random.normal(k5, (C, C, 3, 3), jnp.float32) / (C * 9) ** 0.5
    w2b = jax.random.normal(k6, (C, C, 3, 3), jnp.float32) / (C * 9) ** 0.5

    out2 = jax.block_until_ready(residual_block_pallas(x2, w1b, w2b, None, stride=1))
    ref2 = jax.block_until_ready(residual_block_ref(x2, w1b, w2b, None))
    assert out2.shape == (N, C, H, W), out2.shape
    _check(out2, ref2, "identity")

    # Case 3: larger batch with an explicit batch tile -> multi-step "parallel" grid.
    N3 = 6
    x3 = jax.random.normal(k7, (N3, Cin, H, W), jnp.float32)
    out3 = jax.block_until_ready(
        residual_block_pallas(x3, w1, w2, ws, stride=1, batch_tile=2))   # grid = (3,)
    ref3 = jax.block_until_ready(residual_block_ref(x3, w1, w2, ws))
    assert out3.shape == (N3, Cout, H, W), out3.shape
    _check(out3, ref3, "batched-grid")

    print("KERNEL_OK")
</pallas_src>

<mosaic_0001>
module attributes {stable_mosaic.version = 11 : i64} {
  func.func @_residual_block_kernel_proj(%arg0: i32, %arg1: memref<2x16x64xf32, #tpu.memory_space<vmem>>, %arg2: memref<3x64x128xbf16, #tpu.memory_space<vmem>>, %arg3: memref<3x128x128xbf16, #tpu.memory_space<vmem>>, %arg4: memref<64x128xbf16, #tpu.memory_space<vmem>>, %arg5: memref<2x16x128xf32, #tpu.memory_space<vmem>>) attributes {dimension_semantics = [#tpu.dimension_semantics<parallel>], iteration_bounds = array<i64: 1>, scalar_prefetch = 0 : i64, scratch_operands = 0 : i64, tpu.core_type = #tpu.core_type<tc>, window_params = [{transform_indices = @transform_0, window_bounds = array<i64: 2, 16, 64>}, {pipeline_mode = #tpu.pipeline_mode<synchronous>, transform_indices = @transform_1, window_bounds = array<i64: 3, 64, 128>}, {pipeline_mode = #tpu.pipeline_mode<synchronous>, transform_indices = @transform_2, window_bounds = array<i64: 3, 128, 128>}, {pipeline_mode = #tpu.pipeline_mode<synchronous>, transform_indices = @transform_3, window_bounds = array<i64: 64, 128>}, {transform_indices = @transform_4, window_bounds = array<i64: 2, 16, 128>}]} {
    %c0 = arith.constant 0 : index
    %c0_0 = arith.constant 0 : index
    %c0_1 = arith.constant 0 : index
    %0 = vector.load %arg1[%c0, %c0_0, %c0_1] : memref<2x16x64xf32, #tpu.memory_space<vmem>>, vector<2x16x64xf32>
    %1 = vector.shape_cast %0 : vector<2x16x64xf32> to vector<32x64xf32>
    %2 = tpu.iota {dimensions = array<i32: 0>} : vector<32x1xi32>
    %c16_i32 = arith.constant 16 : i32
    %c0_i32 = arith.constant 0 : i32
    %3 = arith.cmpi eq, %c16_i32, %c0_i32 : i32
    %c1_i32 = arith.constant 1 : i32
    %4 = arith.select %3, %c1_i32, %c16_i32 : i32
    %5 = vector.broadcast %4 : i32 to vector<32x1xi32>
    %6 = arith.remsi %2, %5 : vector<32x1xi32>
    %c0_i32_2 = arith.constant 0 : i32
    %7 = vector.broadcast %c0_i32_2 : i32 to vector<32x1xi32>
    %8 = arith.cmpi ne, %6, %7 : vector<32x1xi32>
    %c0_i32_3 = arith.constant 0 : i32
    %9 = vector.broadcast %c0_i32_3 : i32 to vector<32x1xi32>
    %10 = arith.cmpi slt, %6, %9 : vector<32x1xi32>
    %c0_i32_4 = arith.constant 0 : i32
    %11 = arith.cmpi slt, %4, %c0_i32_4 : i32
    %12 = vector.broadcast %11 : i1 to vector<32x1xi1>
    %13 = vector.broadcast %12 : vector<32x1xi1> to vector<32x1xi1>
    %14 = arith.xori %10, %13 : vector<32x1xi1>
    %15 = arith.andi %14, %8 : vector<32x1xi1>
    %16 = vector.broadcast %4 : i32 to vector<32x1xi32>
    %17 = arith.addi %6, %16 : vector<32x1xi32>
    %18 = arith.select %15, %17, %6 : vector<32x1xi1>, vector<32x1xi32>
    %19 = arith.truncf %1 : vector<32x64xf32> to vector<32x64xbf16>
    %c0_5 = arith.constant 0 : index
    %c0_6 = arith.constant 0 : index
    %c0_7 = arith.constant 0 : index
    %20 = vector.load %arg2[%c0_5, %c0_6, %c0_7] : memref<3x64x128xbf16, #tpu.memory_space<vmem>>, vector<1x64x128xbf16>
    %21 = vector.shape_cast %20 : vector<1x64x128xbf16> to vector<64x128xbf16>
    %cst = arith.constant dense<0.000000e+00> : vector<32x128xf32>
    %22 = tpu.matmul %19, %21, %cst {dimension_numbers = #tpu.dot_dimension_numbers<[1], [0], [0], [1], [0, 0, 1, 1], [], []>} : vector<32x64xbf16>, vector<64x128xbf16>, vector<32x128xf32> -> vector<32x128xf32>
    %c1 = arith.constant 1 : index
    %c0_8 = arith.constant 0 : index
    %c0_9 = arith.constant 0 : index
    %23 = vector.load %arg2[%c1, %c0_8, %c0_9] : memref<3x64x128xbf16, #tpu.memory_space<vmem>>, vector<1x64x128xbf16>
    %24 = vector.shape_cast %23 : vector<1x64x128xbf16> to vector<64x128xbf16>
    %cst_10 = arith.constant dense<0.000000e+00> : vector<32x128xf32>
    %25 = tpu.matmul %19, %24, %cst_10 {dimension_numbers = #tpu.dot_dimension_numbers<[1], [0], [0], [1], [0, 0, 1, 1], [], []>} : vector<32x64xbf16>, vector<64x128xbf16>, vector<32x128xf32> -> vector<32x128xf32>
    %c2 = arith.constant 2 : index
    %c0_11 = arith.constant 0 : index
    %c0_12 = arith.constant 0 : index
    %26 = vector.load %arg2[%c2, %c0_11, %c0_12] : memref<3x64x128xbf16, #tpu.memory_space<vmem>>, vector<1x64x128xbf16>
    %27 = vector.shape_cast %26 : vector<1x64x128xbf16> to vector<64x128xbf16>
    %cst_13 = arith.constant dense<0.000000e+00> : vector<32x128xf32>
    %28 = tpu.matmul %19, %27, %cst_13 {dimension_numbers = #tpu.dot_dimension_numbers<[1], [0], [0], [1], [0, 0, 1, 1], [], []>} : vector<32x64xbf16>, vector<64x128xbf16>, vector<32x128xf32> -> vector<32x128xf32>
    %c0_i32_14 = arith.constant 0 : i32
    %29 = vector.broadcast %c0_i32_14 : i32 to vector<32x1xi32>
    %30 = arith.cmpi eq, %18, %29 : vector<32x1xi32>
    %c1_i32_15 = arith.constant 1 : i32
    %31 = tpu.dynamic_rotate %22 by %c1_i32_15 dim 0 : vector<32x128xf32>, i32 -> vector<32x128xf32>
    %cst_16 = arith.constant 0.000000e+00 : f32
    %32 = vector.shape_cast %30 : vector<32x1xi1> to vector<32x1xi1>
    %33 = vector.broadcast %32 : vector<32x1xi1> to vector<32x128xi1>
    %34 = vector.broadcast %cst_16 : f32 to vector<32x128xf32>
    %35 = arith.select %33, %34, %31 : vector<32x128xi1>, vector<32x128xf32>
    %c15_i32 = arith.constant 15 : i32
    %36 = vector.broadcast %c15_i32 : i32 to vector<32x1xi32>
    %37 = arith.cmpi eq, %18, %36 : vector<32x1xi32>
    %c31_i32 = arith.constant 31 : i32
    %38 = tpu.dynamic_rotate %28 by %c31_i32 dim 0 : vector<32x128xf32>, i32 -> vector<32x128xf32>
    %cst_17 = arith.constant 0.000000e+00 : f32
    %39 = vector.shape_cast %37 : vector<32x1xi1> to vector<32x1xi1>
    %40 = vector.broadcast %39 : vector<32x1xi1> to vector<32x128xi1>
    %41 = vector.broadcast %cst_17 : f32 to vector<32x128xf32>
    %42 = arith.select %40, %41, %38 : vector<32x128xi1>, vector<32x128xf32>
    %43 = arith.addf %25, %35 : vector<32x128xf32>
    %44 = arith.addf %43, %42 : vector<32x128xf32>
    %cst_18 = arith.constant 0.000000e+00 : f32
    %45 = vector.broadcast %cst_18 : f32 to vector<32x128xf32>
    %46 = arith.maximumf %44, %45 : vector<32x128xf32>
    %47 = arith.truncf %46 : vector<32x128xf32> to vector<32x128xbf16>
    %c0_19 = arith.constant 0 : index
    %c0_20 = arith.constant 0 : index
    %c0_21 = arith.constant 0 : index
    %48 = vector.load %arg3[%c0_19, %c0_20, %c0_21] : memref<3x128x128xbf16, #tpu.memory_space<vmem>>, vector<1x128x128xbf16>
    %49 = vector.shape_cast %48 : vector<1x128x128xbf16> to vector<128x128xbf16>
    %cst_22 = arith.constant dense<0.000000e+00> : vector<32x128xf32>
    %50 = tpu.matmul %47, %49, %cst_22 {dimension_numbers = #tpu.dot_dimension_numbers<[1], [0], [0], [1], [0, 0, 1, 1], [], []>} : vector<32x128xbf16>, vector<128x128xbf16>, vector<32x128xf32> -> vector<32x128xf32>
    %c1_23 = arith.constant 1 : index
    %c0_24 = arith.constant 0 : index
    %c0_25 = arith.constant 0 : index
    %51 = vector.load %arg3[%c1_23, %c0_24, %c0_25] : memref<3x128x128xbf16, #tpu.memory_space<vmem>>, vector<1x128x128xbf16>
    %52 = vector.shape_cast %51 : vector<1x128x128xbf16> to vector<128x128xbf16>
    %cst_26 = arith.constant dense<0.000000e+00> : vector<32x128xf32>
    %53 = tpu.matmul %47, %52, %cst_26 {dimension_numbers = #tpu.dot_dimension_numbers<[1], [0], [0], [1], [0, 0, 1, 1], [], []>} : vector<32x128xbf16>, vector<128x128xbf16>, vector<32x128xf32> -> vector<32x128xf32>
    %c2_27 = arith.constant 2 : index
    %c0_28 = arith.constant 0 : index
    %c0_29 = arith.constant 0 : index
    %54 = vector.load %arg3[%c2_27, %c0_28, %c0_29] : memref<3x128x128xbf16, #tpu.memory_space<vmem>>, vector<1x128x128xbf16>
    %55 = vector.shape_cast %54 : vector<1x128x128xbf16> to vector<128x128xbf16>
    %cst_30 = arith.constant dense<0.000000e+00> : vector<32x128xf32>
    %56 = tpu.matmul %47, %55, %cst_30 {dimension_numbers = #tpu.dot_dimension_numbers<[1], [0], [0], [1], [0, 0, 1, 1], [], []>} : vector<32x128xbf16>, vector<128x128xbf16>, vector<32x128xf32> -> vector<32x128xf32>
    %c0_i32_31 = arith.constant 0 : i32
    %57 = vector.broadcast %c0_i32_31 : i32 to vector<32x1xi32>
    %58 = arith.cmpi eq, %18, %57 : vector<32x1xi32>
    %c1_i32_32 = arith.constant 1 : i32
    %59 = tpu.dynamic_rotate %50 by %c1_i32_32 dim 0 : vector<32x128xf32>, i32 -> vector<32x128xf32>
    %cst_33 = arith.constant 0.000000e+00 : f32
    %60 = vector.shape_cast %58 : vector<32x1xi1> to vector<32x1xi1>
    %61 = vector.broadcast %60 : vector<32x1xi1> to vector<32x128xi1>
    %62 = vector.broadcast %cst_33 : f32 to vector<32x128xf32>
    %63 = arith.select %61, %62, %59 : vector<32x128xi1>, vector<32x128xf32>
    %c15_i32_34 = arith.constant 15 : i32
    %64 = vector.broadcast %c15_i32_34 : i32 to vector<32x1xi32>
    %65 = arith.cmpi eq, %18, %64 : vector<32x1xi32>
    %c31_i32_35 = arith.constant 31 : i32
    %66 = tpu.dynamic_rotate %56 by %c31_i32_35 dim 0 : vector<32x128xf32>, i32 -> vector<32x128xf32>
    %cst_36 = arith.constant 0.000000e+00 : f32
    %67 = vector.shape_cast %65 : vector<32x1xi1> to vector<32x1xi1>
    %68 = vector.broadcast %67 : vector<32x1xi1> to vector<32x128xi1>
    %69 = vector.broadcast %cst_36 : f32 to vector<32x128xf32>
    %70 = arith.select %68, %69, %66 : vector<32x128xi1>, vector<32x128xf32>
    %71 = arith.addf %53, %63 : vector<32x128xf32>
    %72 = arith.addf %71, %70 : vector<32x128xf32>
    %73 = arith.truncf %1 : vector<32x64xf32> to vector<32x64xbf16>
    %c0_37 = arith.constant 0 : index
    %c0_38 = arith.constant 0 : index
    %74 = vector.load %arg4[%c0_37, %c0_38] : memref<64x128xbf16, #tpu.memory_space<vmem>>, vector<64x128xbf16>
    %cst_39 = arith.constant dense<0.000000e+00> : vector<32x128xf32>
    %75 = tpu.matmul %73, %74, %cst_39 {dimension_numbers = #tpu.dot_dimension_numbers<[1], [0], [0], [1], [0, 0, 1, 1], [], []>} : vector<32x64xbf16>, vector<64x128xbf16>, vector<32x128xf32> -> vector<32x128xf32>
    %76 = arith.addf %72, %75 : vector<32x128xf32>
    %cst_40 = arith.constant 0.000000e+00 : f32
    %77 = vector.broadcast %cst_40 : f32 to vector<32x128xf32>
    %78 = arith.maximumf %76, %77 : vector<32x128xf32>
    %79 = vector.shape_cast %78 : vector<32x128xf32> to vector<2x16x128xf32>
    %c0_41 = arith.constant 0 : index
    %c0_42 = arith.constant 0 : index
    %c0_43 = arith.constant 0 : index
    %80 = vector.load %arg5[%c0_41, %c0_42, %c0_43] : memref<2x16x128xf32, #tpu.memory_space<vmem>>, vector<2x16x128xf32>
    tpu.vector_store %arg5[%c0_41, %c0_42, %c0_43], %79 {strides = array<i32>} : memref<2x16x128xf32, #tpu.memory_space<vmem>>, vector<2x16x128xf32>,
    return
  }
  func.func @transform_0(%arg0: i32) -> (i32, i32, i32) {
    %c0_i32 = arith.constant 0 : i32
    %c0_i32_0 = arith.constant 0 : i32
    %c0_i32_1 = arith.constant 0 : i32
    return %arg0, %c0_i32, %c0_i32_0 : i32, i32, i32
  }
  func.func @transform_1(%arg0: i32) -> (i32, i32, i32) {
    %c0_i32 = arith.constant 0 : i32
    %c0_i32_0 = arith.constant 0 : i32
    %c0_i32_1 = arith.constant 0 : i32
    %c0_i32_2 = arith.constant 0 : i32
    return %c0_i32, %c0_i32_0, %c0_i32_1 : i32, i32, i32
  }
  func.func @transform_2(%arg0: i32) -> (i32, i32, i32) {
    %c0_i32 = arith.constant 0 : i32
    %c0_i32_0 = arith.constant 0 : i32
    %c0_i32_1 = arith.constant 0 : i32
    %c0_i32_2 = arith.constant 0 : i32
    return %c0_i32, %c0_i32_0, %c0_i32_1 : i32, i32, i32
  }
  func.func @transform_3(%arg0: i32) -> (i32, i32) {
    %c0_i32 = arith.constant 0 : i32
    %c0_i32_0 = arith.constant 0 : i32
    %c0_i32_1 = arith.constant 0 : i32
    return %c0_i32, %c0_i32_0 : i32, i32
  }
  func.func @transform_4(%arg0: i32) -> (i32, i32, i32) {
    %c0_i32 = arith.constant 0 : i32
    %c0_i32_0 = arith.constant 0 : i32
    %c0_i32_1 = arith.constant 0 : i32
    return %arg0, %c0_i32, %c0_i32_0 : i32, i32, i32
  }
}

</mosaic_0001>

<bundles_post_ra>
// kernel: tpu_custom_call.1
= control target key start
LH: loop header
LB: loop body
LE: loop exit
PB: predicated region body
PF: predicated region fallthrough
CT: control target
= control target key end

     0   :  { %9 = vsyncpa [#allocation3], 0  ;;  %s1221_s0 = inlined_call_operand.hbm [shape: f32[2,16,64], index: 0, kind: input, shape index: {}]   ;;  %s1222_s1 = inlined_call_operand.hbm [shape: bf16[3,64,128], index: 1, kind: input, shape index: {}]   ;;  %s1223_s2 = inlined_call_operand.hbm [shape: bf16[3,128,128], index: 2, kind: input, shape index: {}]   ;;  %s1224_s3 = inlined_call_operand.hbm [shape: bf16[64,128], index: 3, kind: input, shape index: {}]   ;;  %s1225_s4 = inlined_call_operand.hbm [shape: f32[2,16,128], index: 4, kind: output, shape index: {}]  }
   0x1   :  { %10 = vsyncpa [#allocation6], 0 }
   0x2   :  { %11 = vsyncpa [#allocation9], 0  ;;  %s30_s17 = sshll.u32 %s1222_s1, 4  ;;  %s31_s17 = int_to_ptr.hbm [resolvable:$true] %s30_s17 }
   0x3   :  { %12 = vsyncpa [#allocation4], 0  ;;  %s1071_s18 = smov [#allocation5]   ;;  %s17_s22 = sshll.u32 %s1221_s0, 4  ;;  %s18_s22 = int_to_ptr.hbm [resolvable:$true] %s17_s22 }
   0x4   :  { %s32_s19 = sshll.u32 %s1071_s18, 4  ;;  %s1072_s23 = smov 64   ;;  %s33_s19 = int_to_ptr.vmem [resolvable:$true] %s32_s19 }
   0x5   :  { %s1073_s24 = smov 4   ;;  %s1074_s25 = smov [#allocation2]  }
   0x6   :  { %38 = dma.hbm_to_vmem [thread:$0]  %s31_s17, 1536, %s33_s19, [#allocation6], %s1072_s23, %s1072_s23, %s1073_s24  }
   0x7   :  { %s19_s26 = sshll.u32 %s1074_s25, 4  ;;  %s1075_s27 = smov 128   ;;  %s20_s26 = int_to_ptr.vmem [resolvable:$true] %s19_s26 }
   0x8   :  { %s1076_s28 = smov 8   ;;  %s43_s30 = sshll.u32 %s1223_s2, 4  ;;  %s44_s30 = int_to_ptr.hbm [resolvable:$true] %s43_s30 }
   0x9   :  { %25 = dma.hbm_to_vmem [thread:$0]  %s18_s22, 512, %s20_s26, [#allocation3], %s1075_s27, %s1075_s27, %s1076_s28  }
   0xa   :  { %s1077_s5 = smov [#allocation7]   ;;  %s56_s8 = sshll.u32 %s1224_s3, 4  ;;  %s57_s8 = int_to_ptr.hbm [resolvable:$true] %s56_s8 }
   0xb   :  { %s45_s0 = sshll.u32 %s1077_s5, 4  ;;  %s1078_s9 = smov [#allocation8]   ;;  %s46_s0 = int_to_ptr.vmem [resolvable:$true] %s45_s0 }
   0xc   :  { %51 = dma.hbm_to_vmem [thread:$0]  %s44_s30, 3072, %s46_s0, [#allocation6], %s1072_s23, %s1072_s23, %s1073_s24  }
   0xd   :  { %s58_s10 = sshll.u32 %s1078_s9, 4  ;;  %s59_s10 = int_to_ptr.vmem [resolvable:$true] %s58_s10 }
   0xe   :  { %64 = dma.hbm_to_vmem [thread:$0]  %s57_s8, 512, %s59_s10, [#allocation9], %s1072_s23, %s1072_s23, %s1073_s24  }
   0xf   :  { %1063 = dma.done.wait [#allocation3], 512  }
  0x10   :  { %1064 = vsyncadd [#allocation3], 4294966784 }
  0x11   :  { %1065 = dma.done.wait [#allocation6], 4608  }
  0x12   :  { %1066 = vsyncadd [#allocation6], 4294962688 }
  0x13   :  { %1067 = dma.done.wait [#allocation9], 512  }
  0x14   :  { %1068 = vsyncadd [#allocation9], 4294966784  ;;  %v897_v0 = vld [vmem:[#allocation5 + $0x18] sm:$0xff]  ;;  %v896_v3 = vld [vmem:[#allocation5 + $0x10] sm:$0xff]  ;;  %vm173_vm0 = vcmask 523264   ;;  %v86_v51 = vlaneseq  ;;  %s1079_s2 = smov [#allocation10]  }
  0x15   :  { %v905_v1 = vld [vmem:[#allocation5 + $0x58] sm:$0xff]  ;;  %184 = vmatpush.bf16.msra.mxu0 %v897_v0  ;;  %v904_v4 = vld [vmem:[#allocation5 + $0x50] sm:$0xff]  ;;  %v895_v6 = vld [vmem:[#allocation5 + $0x8] sm:$0xff]  ;;  %s709_s3 = sshll.u32 %s1079_s2, 4  ;;  %s711_s13 = sshll.u32 %s1225_s4, 4  ;;  %s710_s3 = int_to_ptr.vmem [resolvable:$true] %s709_s3  ;;  %s712_s13 = int_to_ptr.hbm [resolvable:$true] %s711_s13 }
  0x16   :  { %v901_v2 = vld [vmem:[#allocation5 + $0x38] sm:$0xff]  ;;  %245 = vmatpush.bf16.msra.mxu1 %v905_v1  ;;  %v900_v5 = vld [vmem:[#allocation5 + $0x30] sm:$0xff]  ;;  %v903_v7 = vld [vmem:[#allocation5 + $0x48] sm:$0xff]  ;;  %v1140_v52 = vshrl.u32 %v86_v51, 7 }
  0x17   :  { %338 = vmatpush.bf16.msra.mxu2 %v901_v2  ;;  %v899_v8 = vld [vmem:[#allocation5 + $0x28] sm:$0xff]  ;;  %v894_v9 = vld [vmem:[#allocation5] sm:$0xff]  ;;  %v84_v15 = vld [vmem:[#allocation2 + $0x10] sm:$0xff] }
  0x18   :  { %v902_v10 = vld [vmem:[#allocation5 + $0x40] sm:$0xff]  ;;  %v83_v12 = vld [vmem:[#allocation2 + $0x8] sm:$0xff]  ;;  %v85_v16 = vld [vmem:[#allocation2 + $0x18] sm:$0xff]  ;;  %v88_v54 = vadd.s32 8, %v1140_v52  ;;  %v95_v60 = vand.u32 15, %v1140_v52  ;;  %vm293_vm1 = vcmp.lt.s32.totalorder %v1140_v52, 7 }
  0x19   :  { %185 = vmatpush.bf16.msra.mxu0 %v896_v3  ;;  %v82_v11 = vld [vmem:[#allocation2] sm:$0xff]  ;;  %v1128_v17 = vpack.c.bf16 %v85_v16, %v84_v15  ;;  %v913_v18 = vld [vmem:[#allocation7 + $0x38] sm:$0xff]  ;;  %v912_v21 = vld [vmem:[#allocation7 + $0x30] sm:$0xff]  ;;  %vm268_vm2 = vcmp.lt.s32.totalorder %v1140_v52, 1  ;;  %v90_v15 = vadd.s32 24, %v1140_v52 }
  0x1a   :  { %246 = vmatpush.bf16.msra.mxu1 %v904_v4  ;;  %v898_v13 = vld [vmem:[#allocation5 + $0x20] sm:$0xff]  ;;  %v1120_v14 = vpack.c.bf16 %v83_v12, %v82_v11  ;;  %v929_v19 = vld [vmem:[#allocation7 + $0xb8] sm:$0xff]  ;;  %427 = vmatpush.bf16.msra.mxu3 %v913_v18  ;;  %v928_v22 = vld [vmem:[#allocation7 + $0xb0] sm:$0xff]  ;;  %v102_v57 = vand.u32 15, %v88_v54  ;;  %vm1154_vm4 = vcmp.eq.s32.totalorder %v95_v60, 0 }
  0x1b   :  { %339 = vmatpush.bf16.msra.mxu2 %v900_v5  ;;  %v921_v20 = vld [vmem:[#allocation7 + $0x78] sm:$0xff]  ;;  %v920_v23 = vld [vmem:[#allocation7 + $0x70] sm:$0xff]  ;;  %v911_v25 = vld [vmem:[#allocation7 + $0x28] sm:$0xff] }
  0x1c   :  { %v933_v24 = vld [vmem:[#allocation8 + $0x18] sm:$0xff]  ;;  %v927_v26 = vld [vmem:[#allocation7 + $0xa8] sm:$0xff]  ;;  %v910_v28 = vld [vmem:[#allocation7 + $0x20] sm:$0xff]  ;;  %vm1146_vm3 = vcmp.eq.s32.totalorder %v102_v57, 15 }
  0x1d   :  { %186 = vmatpush.bf16.msra.mxu0 %v895_v6  ;;  %v919_v27 = vld [vmem:[#allocation7 + $0x68] sm:$0xff]  ;;  %v926_v29 = vld [vmem:[#allocation7 + $0xa0] sm:$0xff]  ;;  %v932_v31 = vld [vmem:[#allocation8 + $0x10] sm:$0xff] }
  0x1e   :  { %247 = vmatpush.bf16.msra.mxu1 %v903_v7  ;;  %428 = vmatpush.bf16.msra.mxu3 %v912_v21  ;;  %v918_v30 = vld [vmem:[#allocation7 + $0x60] sm:$0xff]  ;;  %v909_v32 = vld [vmem:[#allocation7 + $0x18] sm:$0xff]  ;;  %v908_v35 = vld [vmem:[#allocation7 + $0x10] sm:$0xff] }
  0x1f   :  { %340 = vmatpush.bf16.msra.mxu2 %v899_v8  ;;  %v925_v33 = vld [vmem:[#allocation7 + $0x98] sm:$0xff]  ;;  %v924_v36 = vld [vmem:[#allocation7 + $0x90] sm:$0xff]  ;;  %v931_v38 = vld [vmem:[#allocation8 + $0x8] sm:$0xff] }
  0x20   :  { %v917_v34 = vld [vmem:[#allocation7 + $0x58] sm:$0xff]  ;;  %v916_v37 = vld [vmem:[#allocation7 + $0x50] sm:$0xff]  ;;  %v907_v39 = vld [vmem:[#allocation7 + $0x8] sm:$0xff] }
  0x21   :  { %187 = vmatpush.bf16.msra.mxu0 %v894_v9  ;;  %v923_v40 = vld [vmem:[#allocation7 + $0x88] sm:$0xff]  ;;  %v906_v44 = vld [vmem:[#allocation7] sm:$0xff] }
  0x22   :  { %248 = vmatpush.bf16.msra.mxu1 %v902_v10  ;;  %429 = vmatpush.bf16.msra.mxu3 %v911_v25  ;;  %v915_v41 = vld [vmem:[#allocation7 + $0x48] sm:$0xff]  ;;  %v922_v45 = vld [vmem:[#allocation7 + $0x80] sm:$0xff] }
  0x23   :  { %341 = vmatpush.bf16.msra.mxu2 %v898_v13  ;;  %v914_v46 = vld [vmem:[#allocation7 + $0x40] sm:$0xff] }
  0x24   :  { %742 = vmatmul.msk.bf16.vlgmr.msra.gmra.mxu0 %vm173_vm0, %v1120_v14  ;;  %v930_v47 = vld [vmem:[#allocation8] sm:$0xff] }
  0x25   :  { %760 = vmatmul.msk.bf16.vlgmr.msra.gmra.mxu1 %vm173_vm0, %v1120_v14  ;;  %528 = vmatpush.bf16.msrb.mxu0 %v929_v19 }
  0x26   :  { %778 = vmatmul.msk.bf16.vlgmr.msra.gmra.mxu2 %vm173_vm0, %v1120_v14  ;;  %619 = vmatpush.bf16.msrb.mxu1 %v921_v20 }
  0x27   :  { %678 = vmatpush.bf16.msrb.mxu2 %v933_v24  ;;  %430 = vmatpush.bf16.msra.mxu3 %v910_v28 }
  0x29   :  { %529 = vmatpush.bf16.msrb.mxu0 %v928_v22 }
  0x2a   :  { %620 = vmatpush.bf16.msrb.mxu1 %v920_v23  ;;  %v116_v23 = vand.u32 15, %v90_v15 }
  0x2b   :  { %679 = vmatpush.bf16.msrb.mxu2 %v932_v31  ;;  %431 = vmatpush.bf16.msra.mxu3 %v909_v32 }
  0x2c   :  { %vm1179_vm6 = vcmp.eq.s32.totalorder %v116_v23, 15 }
  0x2d   :  { %530 = vmatpush.bf16.msrb.mxu0 %v927_v26 }
  0x2e   :  { %621 = vmatpush.bf16.msrb.mxu1 %v919_v27 }
  0x2f   :  { %432 = vmatpush.bf16.msra.mxu3 %v908_v35  ;;  %680 = vmatpush.bf16.msrb.mxu2 %v931_v38 }
  0x31   :  { %531 = vmatpush.bf16.msrb.mxu0 %v926_v29 }
  0x32   :  { %622 = vmatpush.bf16.msrb.mxu1 %v918_v30 }
  0x33   :  { %433 = vmatpush.bf16.msra.mxu3 %v907_v39  ;;  %681 = vmatpush.bf16.msrb.mxu2 %v930_v47 }
  0x34   :  { %743 = vmatmul.msk.bf16.gmra.mxu0 %vm173_vm0, %v1128_v17 }
  0x35   :  { %761 = vmatmul.msk.bf16.gmra.mxu1 %vm173_vm0, %v1128_v17  ;;  %532 = vmatpush.bf16.msrb.mxu0 %v925_v33 }
  0x36   :  { %779 = vmatmul.msk.bf16.gmra.mxu2 %vm173_vm0, %v1128_v17  ;;  %623 = vmatpush.bf16.msrb.mxu1 %v917_v34 }
  0x37   :  { %434 = vmatpush.bf16.msra.mxu3 %v906_v44 }
  0x39   :  { %533 = vmatpush.bf16.msrb.mxu0 %v924_v36 }
  0x3a   :  { %624 = vmatpush.bf16.msrb.mxu1 %v916_v37 }
  0x3d   :  { %534 = vmatpush.bf16.msrb.mxu0 %v923_v40 }
  0x3e   :  { %625 = vmatpush.bf16.msrb.mxu1 %v915_v41 }
  0x41   :  { %535 = vmatpush.bf16.msrb.mxu0 %v922_v45 }
  0x42   :  { %626 = vmatpush.bf16.msrb.mxu1 %v914_v46 }
  0x46   :  { %892 = vmatmul.msk.bf16.vlgmr.msrb.gmra.mxu2 %vm173_vm0, %v1120_v14  ;;  %v89_v14 = vadd.s32 16, %v1140_v52 }
  0x48   :  { %v109_v20 = vand.u32 15, %v89_v14 }
  0x4a   :  { %vm1171_vm5 = vcmp.eq.s32.totalorder %v109_v20, 0 }
  0x56   :  { %893 = vmatmul.msk.bf16.gmra.mxu2 %vm173_vm0, %v1128_v17 }
  0xa1   :  { %v189_v42 = vpop.f32.mrf.mxu0 }
  0xa2   :  { %v1136_v43 = vpop.f32.mrf.mxu1  ;;  %v264_v0 = vrot.slane %v189_v42, 7 }
  0xa3   :  { %v289_v4 = vrot.slane %v1136_v43, 1 }
  0xa9   :  { %v343_v48 = vpop.f32.mrf.mxu2  ;;  %v191_v49 = vpop.f32.mrf.mxu0 }
  0xaa   :  { %v252_v50 = vpop.f32.mrf.mxu1  ;;  %v265_v61 = vrot.slane %v191_v49, 7 }
  0xab   :  { %v290_v59 = vrot.slane %v252_v50, 1 }
  0xac   :  { %v271_v5 = vsel %vm268_vm2, %v264_v0, %v265_v61 }
  0xad   :  { %v296_v13 = vsel %vm293_vm1, %v289_v4, %v290_v59 }
  0xb1   :  { %v345_v53 = vpop.f32.mrf.mxu2  ;;  %v194_v55 = vpop.f32.mrf.mxu0 }
  0xb2   :  { %v255_v56 = vpop.f32.mrf.mxu1  ;;  %v346_v8 = vadd.f32 %v345_v53, %v271_v5  ;;  %v266_v21 = vrot.slane %v194_v55, 7 }
  0xb3   :  { %v291_v58 = vrot.slane %v255_v56, 1 }
  0xb4   :  { %v270_v28 = vsel %vm268_vm2, %v265_v61, %v266_v21 }
  0xb5   :  { %v295_v63 = vsel %vm293_vm1, %v290_v59, %v291_v58  ;;  %v283_v32 = vsel %vm1171_vm5, 0.0, %v270_v28 }
  0xb6   :  { %v307_v6 = vsel %vm1146_vm3, 0.0, %v295_v63 }
  0xb7   :  { %v354_v12 = vadd.f32 %v346_v8, %v307_v6 }
  0xb9   :  { %v196_v1 = vpop.f32.mrf.mxu0  ;;  %v348_v7 = vpop.f32.mrf.mxu2  ;;  %v358_v19 = vmax.f32 %v354_v12, 0.0 }
  0xba   :  { %v267_v3 = vrot.slane %v196_v1, 7  ;;  %v257_v17 = vpop.f32.mrf.mxu1  ;;  %v349_v35 = vadd.f32 %v348_v7, %v283_v32 }
  0xbb   :  { %v292_v22 = vrot.slane %v257_v17, 1 }
  0xbc   :  { %v272_v9 = vsel %vm268_vm2, %v267_v3, %v264_v0  ;;  %v269_v27 = vsel %vm268_vm2, %v266_v21, %v267_v3 }
  0xbd   :  { %v281_v10 = vsel %vm1154_vm4, 0.0, %v272_v9  ;;  %v297_v30 = vsel %vm293_vm1, %v292_v22, %v289_v4  ;;  %v294_v33 = vsel %vm293_vm1, %v291_v58, %v292_v22 }
  0xbe   :  { %v344_v11 = vadd.f32 %v343_v48, %v281_v10  ;;  %v309_v34 = vsel %vm1179_vm6, 0.0, %v297_v30  ;;  %v355_v37 = vadd.f32 %v349_v35, %v294_v33 }
  0xc0   :  { %v353_v16 = vadd.f32 %v344_v11, %v296_v13  ;;  %v359_v39 = vmax.f32 %v355_v37, 0.0 }
  0xc1   :  { %v350_v25 = vpop.f32.mrf.mxu2 }
  0xc2   :  { %v357_v18 = vmax.f32 %v353_v16, 0.0  ;;  %v351_v31 = vadd.f32 %v350_v25, %v269_v27 }
  0xc4   :  { %v361_v24 = vpack.c.bf16 %v358_v19, %v357_v18  ;;  %v356_v36 = vadd.f32 %v351_v31, %v309_v34 }
  0xc6   :  { %435 = vmatmul.bf16.vlgmr.msra.gmra.mxu3 %v361_v24  ;;  %536 = vmatmul.bf16.vlgmr.msrb.gmra.mxu0 %v361_v24  ;;  %v360_v38 = vmax.f32 %v356_v36, 0.0 }
  0xc7   :  { %627 = vmatmul.bf16.vlgmr.msrb.gmra.mxu1 %v361_v24 }
  0xc8   :  { %v362_v40 = vpack.c.bf16 %v360_v38, %v359_v39 }
  0xc9   :  { %v683_v44 = vpop.f32.mrf.mxu2 }
  0xd1   :  { %v685_v54 = vpop.f32.mrf.mxu2 }
  0xd6   :  { %440 = vmatmul.bf16.gmra.mxu3 %v362_v40  ;;  %541 = vmatmul.bf16.gmra.mxu0 %v362_v40 }
  0xd7   :  { %632 = vmatmul.bf16.gmra.mxu1 %v362_v40 }
  0xd9   :  { %v688_v8 = vpop.f32.mrf.mxu2 }
  0xe1   :  { %v690_v26 = vpop.f32.mrf.mxu2 }
 0x143   :  { %v537_v41 = vpop.f32.mrf.mxu0 }
 0x144   :  { %v628_v42 = vpop.f32.mrf.mxu1  ;;  %v559_v10 = vrot.slane %v537_v41, 1 }
 0x149   :  { %v436_v43 = vpop.f32.mrf.mxu3 }
 0x14a   :  { %v547_v48 = vrot.slane %v436_v43, 7 }
 0x14b   :  { %v539_v45 = vpop.f32.mrf.mxu0 }
 0x14c   :  { %v630_v46 = vpop.f32.mrf.mxu1  ;;  %v560_v51 = vrot.slane %v539_v45, 1 }
 0x14e   :  { %v565_v23 = vsel %vm293_vm1, %v559_v10, %v560_v51 }
 0x151   :  { %v438_v47 = vpop.f32.mrf.mxu3 }
 0x152   :  { %v548_v49 = vrot.slane %v438_v47, 7 }
 0x153   :  { %v542_v50 = vpop.f32.mrf.mxu0 }
 0x154   :  { %v553_v53 = vsel %vm268_vm2, %v547_v48, %v548_v49  ;;  %v561_v55 = vrot.slane %v542_v50, 1  ;;  %v633_v63 = vpop.f32.mrf.mxu1 }
 0x155   :  { %v631_v56 = vadd.f32 %v630_v46, %v553_v53 }
 0x156   :  { %v564_v57 = vsel %vm293_vm1, %v560_v51, %v561_v55 }
 0x157   :  { %v568_v58 = vsel %vm1146_vm3, 0.0, %v564_v57 }
 0x158   :  { %v639_v59 = vadd.f32 %v631_v56, %v568_v58 }
 0x159   :  { %v441_v60 = vpop.f32.mrf.mxu3 }
 0x15a   :  { %v694_v61 = vadd.f32 %v685_v54, %v639_v59  ;;  %v549_v0 = vrot.slane %v441_v60, 7 }
 0x15b   :  { %v544_v1 = vpop.f32.mrf.mxu0 }
 0x15c   :  { %v698_v3 = vmax.f32 %v694_v61, 0.0  ;;  %v552_v4 = vsel %vm268_vm2, %v548_v49, %v549_v0  ;;  %v562_v5 = vrot.slane %v544_v1, 1  ;;  %v635_v16 = vpop.f32.mrf.mxu1 }
 0x15d   :  { %v557_v6 = vsel %vm1171_vm5, 0.0, %v552_v4 }
 0x15e   :  { %702 = vst [vmem:[#allocation10 + $0x8] sm:$0xff] %v698_v3  ;;  %v634_v7 = vadd.f32 %v633_v63, %v557_v6  ;;  %v563_v62 = vsel %vm293_vm1, %v561_v55, %v562_v5  ;;  %v566_v14 = vsel %vm293_vm1, %v562_v5, %v559_v10 }
 0x15f   :  { %v570_v22 = vsel %vm1179_vm6, 0.0, %v566_v14 }
 0x160   :  { %v640_v9 = vadd.f32 %v634_v7, %v563_v62 }
 0x161   :  { %v443_v11 = vpop.f32.mrf.mxu3 }
 0x162   :  { %v695_v12 = vadd.f32 %v688_v8, %v640_v9  ;;  %v550_v13 = vrot.slane %v443_v11, 7 }
 0x164   :  { %v699_v15 = vmax.f32 %v695_v12, 0.0  ;;  %v551_v17 = vsel %vm268_vm2, %v549_v0, %v550_v13  ;;  %v554_v18 = vsel %vm268_vm2, %v550_v13, %v547_v48 }
 0x165   :  { %v555_v19 = vsel %vm1154_vm4, 0.0, %v554_v18  ;;  %v636_v20 = vadd.f32 %v635_v16, %v551_v17 }
 0x166   :  { %703 = vst [vmem:[#allocation10 + $0x10] sm:$0xff] %v699_v15  ;;  %v629_v21 = vadd.f32 %v628_v42, %v555_v19 }
 0x167   :  { %v641_v24 = vadd.f32 %v636_v20, %v570_v22 }
 0x168   :  { %v638_v25 = vadd.f32 %v629_v21, %v565_v23 }
 0x169   :  { %v696_v27 = vadd.f32 %v690_v26, %v641_v24 }
 0x16a   :  { %v693_v2 = vadd.f32 %v683_v44, %v638_v25 }
 0x16b   :  { %v700_v28 = vmax.f32 %v696_v27, 0.0 }
 0x16c   :  { %v697_v30 = vmax.f32 %v693_v2, 0.0 }
 0x16d   :  { %704 = vst [vmem:[#allocation10 + $0x18] sm:$0xff] %v700_v28 }
 0x16e   :  { %701 = vst [vmem:[#allocation10] sm:$0xff] %v697_v30 }
 0x16f   :  { %717 = dma.vmem_to_hbm [thread:$0]  %s710_s3, 512, %s712_s13, [#allocation4], %s1075_s27, %s1075_s27, %s1076_s28  }
 0x170   :  { %1069 = dma.done.wait [#allocation4], 512  }
 0x171   :  { %1070 = vsyncadd [#allocation4], 4294966784 }
 0x172   :  { %722 = vsyncpa [#allocation3], 1 }
 0x173   :  { %723 = vsyncpa [#allocation6], 1 }
 0x174   :  { %724 = vsyncpa [#allocation9], 1 }
 0x175   :  { %725 = vsyncpa [#allocation4], 1 }

</bundles_post_ra>
